<compile_context>
chip_gen: v7x
topology: tpu7x:2x2x1
jax: 0.10.0
libtpu: 0.0.40
codegen_flags: <defaults>
</compile_context>

<pallas_src>
import functools

import jax
import jax.numpy as jnp
from jax.experimental import pallas as pl
from jax.experimental.pallas import tpu as pltpu

_MIB = 1024 * 1024


def _mish_kernel(x_ref, o_ref, *, approx_recip):
    xf = x_ref[...].astype(jnp.float32)
    # tanh(softplus(x)) == (t^2 + 2t) / (t^2 + 2t + 2), with t = exp(x).
    # Clamp the exp input and pass x through for large x (ratio -> 1 there).
    t = jnp.exp(jnp.minimum(xf, 20.0))
    num = t * (t + 2.0)
    den = num + 2.0
    if approx_recip:
        # EUP approx reciprocal: rel. error ~2^-12, far below one bf16 ulp.
        r = num * pl.reciprocal(den, approx=True)
    else:
        r = num / den
    y = xf * r
    o_ref[...] = jnp.where(xf > 20.0, xf, y).astype(o_ref.dtype)


def _chip_budget():
    """Per-generation (block element budget, vmem_limit_bytes)."""
    kind = ""
    try:
        kind = jax.devices()[0].device_kind.lower()
    except Exception:
        pass
    if "v7" in kind:
        # 64 MiB VMEM per TensorCore: 4 in-flight buffers + f32 temporaries of
        # a 1.5M-element block (~6 MiB f32 / 3 MiB bf16) stay well under it.
        return 3 * _MIB // 2, 56 * _MIB
    # v5e / v6e: 128 MiB physical VMEM -> 2M-element blocks (8 MiB f32).
    return 2 * _MIB, 96 * _MIB


def _mish_2d(x2d, *, block_rows, lane_w, vmem_limit, approx_recip):
    rows = x2d.shape[0]
    kernel = functools.partial(_mish_kernel, approx_recip=approx_recip)
    return pl.pallas_call(
        kernel,
        out_shape=jax.ShapeDtypeStruct(x2d.shape, x2d.dtype),
        grid_spec=pltpu.PrefetchScalarGridSpec(
            num_scalar_prefetch=0,
            grid=(pl.cdiv(rows, block_rows),),
            in_specs=[pl.BlockSpec((block_rows, lane_w), lambda i: (i, 0))],
            out_specs=pl.BlockSpec((block_rows, lane_w), lambda i: (i, 0)),
        ),
        compiler_params=pltpu.CompilerParams(
            dimension_semantics=("parallel",),
            vmem_limit_bytes=vmem_limit,
        ),
        cost_estimate=pl.CostEstimate(
            flops=6 * x2d.size,
            transcendentals=2 * x2d.size,
            bytes_accessed=2 * x2d.size * x2d.dtype.itemsize,
        ),
    )(x2d)


@jax.jit
def mish(x):
    """Elementwise Mish. Accepts any shape (e.g. NCHW), returns same shape/dtype."""
    orig_shape = x.shape
    dtype = x.dtype
    n = x.size
    itemsize = dtype.itemsize
    sub_min = 8 * (4 // itemsize)          # sublane tile: 8 (f32) / 16 (bf16)

    block_elems, vmem_limit = _chip_budget()
    approx_recip = dtype == jnp.bfloat16   # keep exact divide for f32 accuracy

    x_flat = jnp.reshape(x, (-1,))

    # Pad only to a multiple of 128 lanes; for typical conv activation sizes
    # (n % 128 == 0) this path is pure reshapes -> zero extra HBM passes.
    n_pad = pl.cdiv(n, 128) * 128
    if n_pad != n:
        # TODO(synk): rare (<128-elem tail) fallback still pays a pad + slice
        # pass; could be split off as a separate tiny op instead.
        x_flat = jnp.pad(x_flat, (0, n_pad - n))

    # Largest lane-dense width dividing the (possibly padded) length.
    lane_w = 128
    for cand in (1024, 512, 256):
        if n_pad % cand == 0:
            lane_w = cand
            break
    rows = n_pad // lane_w

    # Multi-MiB blocks (amortize ~0.35us per grid step), sublane-aligned, and
    # capped so the grid has >=2 steps whenever rows > one sublane tile
    # (lets v7x shard the parallel axis across both TensorCores).
    block_rows = max(sub_min, (block_elems // lane_w // sub_min) * sub_min)
    if rows > sub_min:
        half_rows = pl.cdiv(pl.cdiv(rows, 2), sub_min) * sub_min
        block_rows = min(block_rows, half_rows)
    block_rows = min(block_rows, rows)     # rows <= sub_min -> full-dim block

    x2d = jnp.reshape(x_flat, (rows, lane_w))
    out2d = _mish_2d(x2d, block_rows=block_rows, lane_w=lane_w,
                     vmem_limit=vmem_limit, approx_recip=approx_recip)

    out_flat = jnp.reshape(out2d, (-1,))
    if n_pad != n:
        out_flat = out_flat[:n]
    return jnp.reshape(out_flat, orig_shape)


def _mish_ref(x):
    xf = x.astype(jnp.float32)
    return (xf * jnp.tanh(jax.nn.softplus(xf))).astype(x.dtype)


if __name__ == "__main__":
    key = jax.random.PRNGKey(0)
    # Small NCHW input consistent with a conv-net activation: (N=2, C=4, H=16, W=16)
    x = jax.random.normal(key, (2, 4, 16, 16), dtype=jnp.float32) * 3.0

    y = jax.block_until_ready(mish(x))
    y_ref = _mish_ref(x)
    assert y.shape == x.shape and y.dtype == x.dtype
    assert float(jnp.max(jnp.abs(y - y_ref))) < 1e-5

    # bf16 path (uses the approx-reciprocal variant); tolerance ~ one bf16 ulp at |y|~12.
    xb = x.astype(jnp.bfloat16)
    yb = jax.block_until_ready(mish(xb))
    assert yb.shape == xb.shape and yb.dtype == xb.dtype
    diff_b = jnp.max(jnp.abs(yb.astype(jnp.float32) - _mish_ref(xb).astype(jnp.float32)))
    assert float(diff_b) < 0.15

    # rows=10 with block_rows=8 -> exercises the masked ragged last row-block.
    x2 = jax.random.normal(jax.random.PRNGKey(1), (2, 5, 32, 32), dtype=jnp.float32) * 3.0
    y2 = jax.block_until_ready(mish(x2))
    assert float(jnp.max(jnp.abs(y2 - _mish_ref(x2)))) < 1e-5

    # n not a multiple of 128 -> small pad/slice fallback path.
    x3 = jax.random.normal(jax.random.PRNGKey(2), (3, 17, 19), dtype=jnp.float32) * 3.0
    y3 = jax.block_until_ready(mish(x3))
    assert y3.shape == x3.shape and y3.dtype == x3.dtype
    assert float(jnp.max(jnp.abs(y3 - _mish_ref(x3)))) < 1e-5

    print("KERNEL_OK")
</pallas_src>

<mosaic_0001>
module attributes {stable_mosaic.version = 11 : i64} {
  func.func @_mish_kernel(%arg0: i32, %arg1: memref<2x1024xf32, #tpu.memory_space<vmem>>, %arg2: memref<2x1024xf32, #tpu.memory_space<vmem>>) attributes {dimension_semantics = [#tpu.dimension_semantics<parallel>], iteration_bounds = array<i64: 1>, scalar_prefetch = 0 : i64, scratch_operands = 0 : i64, tpu.core_type = #tpu.core_type<tc>, window_params = [{transform_indices = @transform_0, window_bounds = array<i64: 2, 1024>}, {transform_indices = @transform_1, window_bounds = array<i64: 2, 1024>}]} {
    %c0 = arith.constant 0 : index
    %c0_0 = arith.constant 0 : index
    %0 = vector.load %arg1[%c0, %c0_0] : memref<2x1024xf32, #tpu.memory_space<vmem>>, vector<2x1024xf32>
    %cst = arith.constant 2.000000e+01 : f32
    %1 = vector.broadcast %cst : f32 to vector<2x1024xf32>
    %2 = arith.minimumf %0, %1 : vector<2x1024xf32>
    %3 = math.exp %2 : vector<2x1024xf32>
    %cst_1 = arith.constant 2.000000e+00 : f32
    %4 = vector.broadcast %cst_1 : f32 to vector<2x1024xf32>
    %5 = arith.addf %3, %4 : vector<2x1024xf32>
    %6 = arith.mulf %3, %5 : vector<2x1024xf32>
    %cst_2 = arith.constant 2.000000e+00 : f32
    %7 = vector.broadcast %cst_2 : f32 to vector<2x1024xf32>
    %8 = arith.addf %6, %7 : vector<2x1024xf32>
    %9 = arith.divf %6, %8 : vector<2x1024xf32>
    %10 = arith.mulf %0, %9 : vector<2x1024xf32>
    %cst_3 = arith.constant 2.000000e+01 : f32
    %11 = vector.broadcast %cst_3 : f32 to vector<2x1024xf32>
    %12 = arith.cmpf ogt, %0, %11 : vector<2x1024xf32>
    %13 = arith.select %12, %0, %10 : vector<2x1024xi1>, vector<2x1024xf32>
    %c0_4 = arith.constant 0 : index
    %c0_5 = arith.constant 0 : index
    %14 = vector.load %arg2[%c0_4, %c0_5] : memref<2x1024xf32, #tpu.memory_space<vmem>>, vector<2x1024xf32>
    tpu.vector_store %arg2[%c0_4, %c0_5], %13 {strides = array<i32>} : memref<2x1024xf32, #tpu.memory_space<vmem>>, vector<2x1024xf32>,
    return
  }
  func.func @transform_0(%arg0: i32) -> (i32, i32) {
    %c0_i32 = arith.constant 0 : i32
    %c0_i32_0 = arith.constant 0 : i32
    return %arg0, %c0_i32 : i32, i32
  }
  func.func @transform_1(%arg0: i32) -> (i32, i32) {
    %c0_i32 = arith.constant 0 : i32
    %c0_i32_0 = arith.constant 0 : i32
    return %arg0, %c0_i32 : i32, i32
  }
}

</mosaic_0001>

<bundles_post_ra>
// kernel: mish.1
= control target key start
LH: loop header
LB: loop body
LE: loop exit
PB: predicated region body
PF: predicated region fallthrough
CT: control target
= control target key end

     0   :  { %6 = vsyncpa [#allocation3], 0  ;;  %s156_s0 = inlined_call_operand.hbm [shape: f32[2,1024], index: 0, kind: input, shape index: {}]   ;;  %s157_s1 = inlined_call_operand.hbm [shape: f32[2,1024], index: 1, kind: output, shape index: {}]  }
   0x1   :  { %7 = vsyncpa [#allocation4], 0  ;;  %s120_s6 = smov [#allocation2]   ;;  %s72_s10 = scalar_lea.hbm %s156_s0, 256 }
   0x2   :  { %s14_s7 = sshll.u32 %s120_s6, 4  ;;  %p73_p0 = scmp.ne.s32.totalorder %s156_s0, %s72_s10  ;;  %s15_s7 = int_to_ptr.vmem [resolvable:$true] %s14_s7 }
   0x3   :  { %p76_p1 = scmp.lt.u32.totalorder %s72_s10, %s156_s0 }
   0x5   :  { %p78_p2 = pnand %p76_p1, %p73_p0 }
   0x7   :  { %81 = shalt.err (!%p78_p2)
}
   0x8   :  { %s82_s15 = scalar_lea.vmem %s15_s7, 256  ;;  %p87_p4 = scmp.lt.s32.totalorder %s15_s7, %s15_s7 }
   0x9   :  { %p83_p3 = scmp.ne.s32.totalorder %s15_s7, %s82_s15  ;;  %p88_p5 = scmp.lt.s32.totalorder %s82_s15, %s82_s15 }
   0xb   :  { %p89_p6 = por %p88_p5, %p87_p4 }
   0xd   :  { %p90_p7 = pnand %p89_p6, %p83_p3 }
   0xf   :  { %93 = shalt.err (!%p90_p7)
}
  0x10   :  { %17 = dma.hbm_to_vmem [thread:$0]  %s156_s0, 256, %s15_s7, [#allocation3]  }
  0x11   :  { %116 = dma.done.wait [#allocation3], 256  }
  0x12   :  { %117 = vsyncadd [#allocation3], 4294967040  ;;  %v21_v0 = vld [vmem:[#allocation2] sm:$0xff]  ;;  %v22_v1 = vld [vmem:[#allocation2 + $0x8] sm:$0xff]  ;;  %s121_s0 = smov [#allocation5]  }
  0x13   :  { %v23_v2 = vmin.f32 %v21_v0, 20.0  ;;  %v24_v3 = vmin.f32 %v22_v1, 20.0  ;;  %vm41_vm0 = vcmp.gt.f32.partialorder %v21_v0, 20.0  ;;  %s53_s18 = sshll.u32 %s121_s0, 4  ;;  %vm42_vm1 = vcmp.gt.f32.partialorder %v22_v1, 20.0  ;;  %s54_s18 = int_to_ptr.vmem [resolvable:$true] %s53_s18 }
  0x14   :  { %s94_s19 = scalar_lea.vmem %s54_s18, 256  ;;  %p99_p9 = scmp.lt.s32.totalorder %s54_s18, %s54_s18 }
  0x15   :  { %v25_v4 = vmul.f32 1.442695, %v23_v2  ;;  %v27_v5 = vmul.f32 1.442695, %v24_v3  ;;  %p95_p8 = scmp.ne.s32.totalorder %s54_s18, %s94_s19  ;;  %p100_p10 = scmp.lt.s32.totalorder %s94_s19, %s94_s19 }
  0x17   :  { %64 = vpow2.f32 %v25_v4  ;;  %p101_p11 = por %p100_p10, %p99_p9 }
  0x18   :  { %66 = vpow2.f32 %v27_v5 }
  0x19   :  { %p102_p12 = pnand %p101_p11, %p95_p8 }
  0x21   :  { %v65_v6 = vpop.eup %64 }
  0x22   :  { %v67_v7 = vpop.eup %66  ;;  %v29_v8 = vadd.f32 2.0, %v65_v6 }
  0x23   :  { %v30_v9 = vadd.f32 2.0, %v67_v7 }
  0x24   :  { %v31_v10 = vmul.f32 %v65_v6, %v29_v8 }
  0x25   :  { %v32_v11 = vmul.f32 %v67_v7, %v30_v9 }
  0x26   :  { %v33_v12 = vadd.f32 2.0, %v31_v10 }
  0x27   :  { %v34_v13 = vadd.f32 2.0, %v32_v11 }
  0x28   :  { %68 = vrcp.f32 %v33_v12 }
  0x29   :  { %70 = vrcp.f32 %v34_v13 }
  0x32   :  { %v69_v14 = vpop.eup %68 }
  0x33   :  { %v71_v15 = vpop.eup %70  ;;  %v36_v16 = vmul.f32 %v69_v14, %v31_v10 }
  0x34   :  { %v38_v17 = vmul.f32 %v71_v15, %v32_v11 }
  0x35   :  { %v39_v18 = vmul.f32 %v36_v16, %v21_v0 }
  0x36   :  { %v40_v19 = vmul.f32 %v38_v17, %v22_v1 }
  0x37   :  { %v43_v20 = vsel %vm41_vm0, %v21_v0, %v39_v18 }
  0x38   :  { %45 = vst [vmem:[#allocation5] sm:$0xff] %v43_v20  ;;  %v44_v21 = vsel %vm42_vm1, %v22_v1, %v40_v19 }
  0x39   :  { %46 = vst [vmem:[#allocation5 + $0x8] sm:$0xff] %v44_v21 }
  0x3a   :  { %105 = shalt.err (!%p102_p12)
}
  0x3b   :  { %s106_s22 = scalar_lea.hbm %s157_s1, 256 }
  0x3c   :  { %p107_p13 = scmp.ne.s32.totalorder %s157_s1, %s106_s22  ;;  %p110_p0 = scmp.lt.u32.totalorder %s106_s22, %s157_s1 }
  0x3e   :  { %p112_p1 = pnand %p110_p0, %p107_p13 }
  0x40   :  { %115 = shalt.err (!%p112_p1)
}
  0x41   :  { %56 = dma.vmem_to_hbm [thread:$0]  %s54_s18, 256, %s157_s1, [#allocation4]  }
  0x42   :  { %118 = dma.done.wait [#allocation4], 256  }
  0x43   :  { %119 = vsyncadd [#allocation4], 4294967040 }
  0x44   :  { %60 = vsyncpa [#allocation3], 1 }
  0x45   :  { %61 = vsyncpa [#allocation4], 1 }

</bundles_post_ra>
